<compile_context>
chip_gen: v7x
topology: tpu7x:2x2x1
jax: 0.10.0
libtpu: 0.0.40
codegen_flags: <defaults>
</compile_context>

<pallas_src>
import functools

import jax
import jax.numpy as jnp
from jax import lax
from jax.experimental import pallas as pl
from jax.experimental.pallas import tpu as pltpu

_NEG_BIG = -1e30  # finite "-inf" for padded classes (avoids inf-inf NaNs)


# --------------------------------------------------------------------------
# hardware introspection helpers (fall back to safe defaults everywhere)
# --------------------------------------------------------------------------
def _round_up(x, m):
    return ((x + m - 1) // m) * m


def _tpu_info():
    try:
        return pltpu.get_tpu_info()
    except Exception:
        return None


def _vmem_capacity_bytes(info):
    cap = None
    if info is not None:
        cap = getattr(info, "vmem_capacity_bytes", None)
    if not isinstance(cap, int) or cap <= 0:
        cap = 64 << 20  # conservative fallback (safe on every generation)
    # defensive clamps against odd reports
    return int(min(max(cap, 32 << 20), 128 << 20))


def _num_tensorcores(info):
    for name in ("num_cores", "tensorcore_count", "num_tensorcores",
                 "cores_per_chip"):
        v = getattr(info, name, None) if info is not None else None
        if isinstance(v, int) and v > 0:
            return v
    try:
        kind = jax.devices()[0].device_kind.lower()
        if "v7" in kind:   # 2 TensorCores per chip on v7x
            return 2
    except Exception:
        pass
    return 1


# --------------------------------------------------------------------------
# kernel: online log-sum-exp over streamed bank tiles
# --------------------------------------------------------------------------
def _mc_lse_kernel(inv_temp, tile_n, tiles_per_part, n_valid, mask_padding,
                   x_ref, f_ref, m_out, l_out,
                   x_sc, m_sc, l_sc):
    """One grid step: one (tile_n, D) tile of the bank for partition p.

    x_ref   : (B, D)     f32   inputs (resident; same block every step)
    f_ref   : (tile_n, D)      tile of the (padded) memory bank
    m/l_out : (1, B, 1)  f32   per-partition partial LSE state (written on
                               the last tile of the partition)
    x_sc    : (B, D)           inputs * (1/temp), cast to bank dtype (hoisted)
    m/l_sc  : (B, 1)     f32   running max / running sum-exp
    """
    p = pl.program_id(0)
    k = pl.program_id(1)

    @pl.when(k == 0)
    def _init():
        # Fold 1/temp into the small (B, D) operand once per partition and
        # cast to the bank's (possibly bf16) dtype for the MXU.
        x_sc[...] = (x_ref[...] * inv_temp).astype(x_sc.dtype)
        m_sc[...] = jnp.full_like(m_sc, -jnp.inf)
        l_sc[...] = jnp.zeros_like(l_sc)

    # sim = (x @ f.T) / temp ; contraction over D of both operands (no f.T
    # materialization), f32 accumulation on the MXU.
    sim = lax.dot_general(
        x_sc[...], f_ref[...],
        dimension_numbers=(((1,), (1,)), ((), ())),
        preferred_element_type=jnp.float32)                    # (B, tile_n)

    if mask_padding:  # static: only emitted when the bank was padded
        tile_start = (p * tiles_per_part + k) * tile_n
        col = lax.broadcasted_iota(jnp.int32, sim.shape, 1)
        sim = jnp.where(col < (n_valid - tile_start), sim, _NEG_BIG)

    # Online log-sum-exp over the class axis.
    m_new = jnp.maximum(m_sc[...], jnp.max(sim, axis=-1, keepdims=True))
    l_sc[...] = (l_sc[...] * jnp.exp(m_sc[...] - m_new)
                 + jnp.sum(jnp.exp(sim - m_new), axis=-1, keepdims=True))
    m_sc[...] = m_new

    @pl.when(k == tiles_per_part - 1)
    def _finalize():
        m_out[0] = m_sc[...]
        l_out[0] = l_sc[...]


# --------------------------------------------------------------------------
# wrapper
# --------------------------------------------------------------------------
def memory_classifier_loss(inputs, indexes, features, temp=0.05,
                           tile_n=None, num_parallel=None, bank_dtype=None):
    """inputs (B, D) f32, indexes (B,) int, features (N, D) -> scalar CE loss."""
    B, D = inputs.shape
    N, D2 = features.shape
    assert D == D2

    inputs_f32 = inputs.astype(jnp.float32)
    feats_f32 = features.astype(jnp.float32)
    indexes = indexes.astype(jnp.int32)

    # Target logits in f32 in the wrapper: a B-row gather + tiny dot
    # (O(B*D), negligible).  Removes per-tile one-hot work from the kernel.
    tgt = jnp.sum(inputs_f32 * feats_f32[indexes], axis=-1) / temp   # (B,)

    # Bank as streamed from HBM.  NOTE: bank_dtype only helps if the bank is
    # *stored* persistently in that dtype (e.g. bf16 on v5e); the cast here
    # just models that storage for testing.
    bank = features
    if bank_dtype is not None and bank.dtype != bank_dtype:
        assert jnp.issubdtype(jnp.dtype(bank_dtype), jnp.floating), (
            "only float bank dtypes are supported here")
        bank = features.astype(bank_dtype)
    itemsize = jnp.dtype(bank.dtype).itemsize

    # --- hardware-aware sizing ------------------------------------------------
    info = _tpu_info()
    vmem_cap = _vmem_capacity_bytes(info)
    if num_parallel is None:
        num_parallel = _num_tensorcores(info)

    D_pad = _round_up(D, 128)          # lane padding of the minor dim in VMEM
    B_pad = _round_up(B, 8)
    sub_mult = max(8, 32 // itemsize)  # sublane packing: 8 f32 / 16 bf16 / 32 fp8

    # VMEM resident independent of tile_n: inputs (double-buffered by the
    # pipeline), the scaled-x scratch, tiny LSE scratch/outputs.
    fixed = (2 * B_pad * D_pad * 4            # inputs block (x2 buffers)
             + B_pad * D_pad * itemsize       # x scratch
             + 6 * B_pad * 128 * 4)           # m/l scratch + tiny outputs

    if tile_n is None:
        # Bank tile is double-buffered; (B, tile_n) f32 intermediates
        # (sim, exp, reductions) budgeted at ~6 live copies.
        usable = int(vmem_cap * 0.65) - fixed
        per_row = 2 * D_pad * itemsize + 6 * B_pad * 4
        t = max(128, usable // per_row)
        t = (t // 128) * 128
        t = min(t, 65536)                       # sanity cap (was 2048)
        t = min(t, _round_up(N, 128))           # don't over-pad small banks
        tile_n = int(max(t, 128))
    assert tile_n % sub_mult == 0, (
        f"tile_n={tile_n} must be a multiple of {sub_mult} for "
        f"{jnp.dtype(bank.dtype)} bank tiles")

    # --- class-axis partitioning (one partition per TensorCore) --------------
    P = max(1, min(int(num_parallel), pl.cdiv(N, tile_n)))
    K = pl.cdiv(pl.cdiv(N, P), tile_n)          # bank tiles per partition
    padded_n = P * K * tile_n
    pad = padded_n - N
    if pad > 0:
        bank = jnp.pad(bank, ((0, pad), (0, 0)))
    mask_padding = pad > 0

    # Explicit VMEM budget: double-buffered bank tile + f32 intermediates +
    # resident state + slack; clamped below physical capacity (v7x = 64 MiB).
    vmem_limit = (2 * tile_n * D_pad * itemsize
                  + 6 * B_pad * tile_n * 4
                  + fixed + (8 << 20))
    vmem_limit = int(min(max(vmem_limit, 32 << 20), int(vmem_cap * 0.9)))

    kernel = functools.partial(
        _mc_lse_kernel,
        float(1.0 / temp), int(tile_n), int(K), int(N), bool(mask_padding))

    out_sds = jax.ShapeDtypeStruct((P, B, 1), jnp.float32)
    m_p, l_p = pl.pallas_call(
        kernel,
        out_shape=(out_sds, out_sds),
        grid_spec=pltpu.PrefetchScalarGridSpec(
            num_scalar_prefetch=0,
            grid=(P, K),
            in_specs=[
                pl.BlockSpec((B, D), lambda p, k: (0, 0)),          # inputs
                pl.BlockSpec((tile_n, D),                            # bank tile
                             lambda p, k: (p * K + k, 0)),
            ],
            out_specs=(
                pl.BlockSpec((1, B, 1), lambda p, k: (p, 0, 0)),
                pl.BlockSpec((1, B, 1), lambda p, k: (p, 0, 0)),
            ),
            scratch_shapes=[
                pltpu.VMEM((B, D), bank.dtype),      # inputs * 1/temp (hoisted)
                pltpu.VMEM((B, 1), jnp.float32),     # running max
                pltpu.VMEM((B, 1), jnp.float32),     # running sum-exp
            ],
        ),
        # NOTE: plain "parallel" suffices on 1-TC chips; on v7x verify in
        # xprof that the P axis shards across both TensorCores (else switch
        # this axis to pltpu.CORE_PARALLEL).
        compiler_params=pltpu.CompilerParams(
            dimension_semantics=("parallel", "arbitrary"),
            vmem_limit_bytes=vmem_limit),
    )(inputs_f32, bank)

    # Merge the per-partition partial LSE state (tiny, plain JAX).
    m_p = m_p[..., 0]                                   # (P, B)
    l_p = l_p[..., 0]
    m = jnp.max(m_p, axis=0)                            # (B,)
    l = jnp.sum(l_p * jnp.exp(m_p - m[None, :]), axis=0)
    lse = m + jnp.log(l)
    return jnp.mean(lse - tgt)


def _reference_loss(inputs, indexes, features, temp=0.05):
    sim = (inputs @ features.T) / temp
    logz = jax.nn.logsumexp(sim, axis=-1)
    tgt = jnp.take_along_axis(sim, indexes[:, None], axis=-1)[:, 0]
    return jnp.mean(logz - tgt)


if __name__ == "__main__":
    # Small shapes consistent with MemoryClassifier(num_features, num_samples).
    B, num_features, num_samples = 8, 32, 256
    temp = 0.05

    key = jax.random.PRNGKey(0)
    k_x, k_f, k_i = jax.random.split(key, 3)

    inputs = jax.random.normal(k_x, (B, num_features), dtype=jnp.float32)
    inputs = inputs / jnp.linalg.norm(inputs, axis=-1, keepdims=True)

    # The registered buffer is zeros in __init__; use a deterministic,
    # L2-normalized bank (what MomentumUpdate maintains) so the loss is
    # non-degenerate.
    features = jax.random.normal(k_f, (num_samples, num_features),
                                 dtype=jnp.float32)
    features = features / jnp.linalg.norm(features, axis=-1, keepdims=True)

    indexes = jax.random.randint(k_i, (B,), 0, num_samples, dtype=jnp.int32)

    ref = _reference_loss(inputs, indexes, features, temp=temp)

    # 1) default config: hardware-derived tile / partition count, f32 bank.
    loss = jax.block_until_ready(
        memory_classifier_loss(inputs, indexes, features, temp=temp))
    assert jnp.allclose(loss, ref, rtol=1e-4, atol=1e-5), (loss, ref)

    # 2) multiple bank tiles per partition (online LSE across k).
    loss2 = jax.block_until_ready(
        memory_classifier_loss(inputs, indexes, features, temp=temp,
                               tile_n=128, num_parallel=1))
    assert jnp.allclose(loss2, ref, rtol=1e-4, atol=1e-5), (loss2, ref)

    # 3) 2-way class split + partial-LSE merge (layout for 2-TC chips).
    loss3 = jax.block_until_ready(
        memory_classifier_loss(inputs, indexes, features, temp=temp,
                               tile_n=128, num_parallel=2))
    assert jnp.allclose(loss3, ref, rtol=1e-4, atol=1e-5), (loss3, ref)

    # 4) non-multiple N (exercises padded-column masking).
    n_odd = 200
    feats_odd = features[:n_odd]
    idx_odd = jnp.minimum(indexes, n_odd - 1)
    ref_odd = _reference_loss(inputs, idx_odd, feats_odd, temp=temp)
    loss4 = jax.block_until_ready(
        memory_classifier_loss(inputs, idx_odd, feats_odd, temp=temp,
                               tile_n=128, num_parallel=2))
    assert jnp.allclose(loss4, ref_odd, rtol=1e-4, atol=1e-5), (loss4, ref_odd)

    # 5) bf16-stored bank (halves HBM bank bytes; f32 MXU accumulation, f32
    #    target logit from the wrapper) — loose check against the f32 ref.
    loss5 = jax.block_until_ready(
        memory_classifier_loss(inputs, indexes, features, temp=temp,
                               bank_dtype=jnp.bfloat16))
    assert jnp.allclose(loss5, ref, rtol=5e-2, atol=5e-2), (loss5, ref)

    print("KERNEL_OK")
</pallas_src>

<mosaic_0001>
module attributes {stable_mosaic.version = 11 : i64} {
  func.func @_mc_lse_kernel(%arg0: i32, %arg1: i32, %arg2: memref<8x32xf32, #tpu.memory_space<vmem>>, %arg3: memref<256x32xf32, #tpu.memory_space<vmem>>, %arg4: memref<1x8x1xf32, #tpu.memory_space<vmem>>, %arg5: memref<1x8x1xf32, #tpu.memory_space<vmem>>, %arg6: memref<8x32xf32, #tpu.memory_space<vmem>>, %arg7: memref<8x1xf32, #tpu.memory_space<vmem>>, %arg8: memref<8x1xf32, #tpu.memory_space<vmem>>) attributes {dimension_semantics = [#tpu.dimension_semantics<parallel>, #tpu.dimension_semantics<arbitrary>], iteration_bounds = array<i64: 1, 1>, scalar_prefetch = 0 : i64, scratch_operands = 3 : i64, tpu.core_type = #tpu.core_type<tc>, window_params = [{pipeline_mode = #tpu.pipeline_mode<synchronous>, transform_indices = @transform_0, window_bounds = array<i64: 8, 32>}, {transform_indices = @transform_1, window_bounds = array<i64: 256, 32>}, {transform_indices = @transform_2, window_bounds = array<i64: 1, 8, 1>}, {transform_indices = @transform_3, window_bounds = array<i64: 1, 8, 1>}]} {
    %c0_i32 = arith.constant 0 : i32
    %0 = arith.cmpi eq, %arg1, %c0_i32 : i32
    %1 = arith.extui %0 : i1 to i32
    %c0_i32_0 = arith.constant 0 : i32
    %2 = arith.cmpi ne, %1, %c0_i32_0 : i32
    scf.if %2 {
      %c0_18 = arith.constant 0 : index
      %c0_19 = arith.constant 0 : index
      %26 = vector.load %arg2[%c0_18, %c0_19] : memref<8x32xf32, #tpu.memory_space<vmem>>, vector<8x32xf32>
      %cst_20 = arith.constant 2.000000e+01 : f32
      %27 = vector.broadcast %cst_20 : f32 to vector<8x32xf32>
      %28 = arith.mulf %26, %27 : vector<8x32xf32>
      %c0_21 = arith.constant 0 : index
      %c0_22 = arith.constant 0 : index
      %29 = vector.load %arg6[%c0_21, %c0_22] : memref<8x32xf32, #tpu.memory_space<vmem>>, vector<8x32xf32>
      tpu.vector_store %arg6[%c0_21, %c0_22], %28 {strides = array<i32>} : memref<8x32xf32, #tpu.memory_space<vmem>>, vector<8x32xf32>,
      %cst_23 = arith.constant 0xFF800000 : f32
      %30 = vector.broadcast %cst_23 : f32 to vector<8x1xf32>
      %c0_24 = arith.constant 0 : index
      %c0_25 = arith.constant 0 : index
      %31 = vector.load %arg7[%c0_24, %c0_25] : memref<8x1xf32, #tpu.memory_space<vmem>>, vector<8x1xf32>
      tpu.vector_store %arg7[%c0_24, %c0_25], %30 {strides = array<i32>} : memref<8x1xf32, #tpu.memory_space<vmem>>, vector<8x1xf32>,
      %cst_26 = arith.constant 0.000000e+00 : f32
      %32 = vector.broadcast %cst_26 : f32 to vector<8x1xf32>
      %c0_27 = arith.constant 0 : index
      %c0_28 = arith.constant 0 : index
      %33 = vector.load %arg8[%c0_27, %c0_28] : memref<8x1xf32, #tpu.memory_space<vmem>>, vector<8x1xf32>
      tpu.vector_store %arg8[%c0_27, %c0_28], %32 {strides = array<i32>} : memref<8x1xf32, #tpu.memory_space<vmem>>, vector<8x1xf32>,
    } else {
    }
    %c0 = arith.constant 0 : index
    %c0_1 = arith.constant 0 : index
    %3 = vector.load %arg6[%c0, %c0_1] : memref<8x32xf32, #tpu.memory_space<vmem>>, vector<8x32xf32>
    %c0_2 = arith.constant 0 : index
    %c0_3 = arith.constant 0 : index
    %4 = vector.load %arg3[%c0_2, %c0_3] : memref<256x32xf32, #tpu.memory_space<vmem>>, vector<256x32xf32>
    %cst = arith.constant dense<0.000000e+00> : vector<8x256xf32>
    %5 = tpu.matmul %3, %4, %cst {dimension_numbers = #tpu.dot_dimension_numbers<[1], [1], [0], [0], [0, 0, 1, 0], [], []>} : vector<8x32xf32>, vector<256x32xf32>, vector<8x256xf32> -> vector<8x256xf32>
    %c0_4 = arith.constant 0 : index
    %c0_5 = arith.constant 0 : index
    %6 = vector.load %arg7[%c0_4, %c0_5] : memref<8x1xf32, #tpu.memory_space<vmem>>, vector<8x1xf32>
    %cst_6 = arith.constant dense<0xFF800000> : vector<8xf32>
    %7 = vector.multi_reduction <maximumf>, %5, %cst_6 [1] : vector<8x256xf32> to vector<8xf32>
    %8 = vector.shape_cast %7 : vector<8xf32> to vector<8x1xf32>
    %9 = arith.maximumf %6, %8 : vector<8x1xf32>
    %c0_7 = arith.constant 0 : index
    %c0_8 = arith.constant 0 : index
    %10 = vector.load %arg8[%c0_7, %c0_8] : memref<8x1xf32, #tpu.memory_space<vmem>>, vector<8x1xf32>
    %c0_9 = arith.constant 0 : index
    %c0_10 = arith.constant 0 : index
    %11 = vector.load %arg7[%c0_9, %c0_10] : memref<8x1xf32, #tpu.memory_space<vmem>>, vector<8x1xf32>
    %12 = arith.subf %11, %9 : vector<8x1xf32>
    %13 = math.exp %12 : vector<8x1xf32>
    %14 = arith.mulf %10, %13 : vector<8x1xf32>
    %15 = vector.broadcast %9 : vector<8x1xf32> to vector<8x256xf32>
    %16 = arith.subf %5, %15 : vector<8x256xf32>
    %17 = math.exp %16 : vector<8x256xf32>
    %cst_11 = arith.constant dense<0.000000e+00> : vector<8xf32>
    %18 = vector.multi_reduction <add>, %17, %cst_11 [1] : vector<8x256xf32> to vector<8xf32>
    %19 = vector.shape_cast %18 : vector<8xf32> to vector<8x1xf32>
    %20 = arith.addf %14, %19 : vector<8x1xf32>
    %c0_12 = arith.constant 0 : index
    %c0_13 = arith.constant 0 : index
    %21 = vector.load %arg8[%c0_12, %c0_13] : memref<8x1xf32, #tpu.memory_space<vmem>>, vector<8x1xf32>
    tpu.vector_store %arg8[%c0_12, %c0_13], %20 {strides = array<i32>} : memref<8x1xf32, #tpu.memory_space<vmem>>, vector<8x1xf32>,
    %c0_14 = arith.constant 0 : index
    %c0_15 = arith.constant 0 : index
    %22 = vector.load %arg7[%c0_14, %c0_15] : memref<8x1xf32, #tpu.memory_space<vmem>>, vector<8x1xf32>
    tpu.vector_store %arg7[%c0_14, %c0_15], %9 {strides = array<i32>} : memref<8x1xf32, #tpu.memory_space<vmem>>, vector<8x1xf32>,
    %c0_i32_16 = arith.constant 0 : i32
    %23 = arith.cmpi eq, %arg1, %c0_i32_16 : i32
    %24 = arith.extui %23 : i1 to i32
    %c0_i32_17 = arith.constant 0 : i32
    %25 = arith.cmpi ne, %24, %c0_i32_17 : i32
    scf.if %25 {
      %c0_18 = arith.constant 0 : index
      %c0_19 = arith.constant 0 : index
      %26 = vector.load %arg7[%c0_18, %c0_19] : memref<8x1xf32, #tpu.memory_space<vmem>>, vector<8x1xf32>
      %c0_20 = arith.constant 0 : index
      %c0_21 = arith.constant 0 : index
      %c0_22 = arith.constant 0 : index
      %27 = vector.load %arg4[%c0_20, %c0_21, %c0_22] : memref<1x8x1xf32, #tpu.memory_space<vmem>>, vector<1x8x1xf32>
      %28 = vector.shape_cast %27 : vector<1x8x1xf32> to vector<8x1xf32>
      %29 = vector.shape_cast %26 : vector<8x1xf32> to vector<1x8x1xf32>
      tpu.vector_store %arg4[%c0_20, %c0_21, %c0_22], %29 {strides = array<i32>} : memref<1x8x1xf32, #tpu.memory_space<vmem>>, vector<1x8x1xf32>,
      %c0_23 = arith.constant 0 : index
      %c0_24 = arith.constant 0 : index
      %30 = vector.load %arg8[%c0_23, %c0_24] : memref<8x1xf32, #tpu.memory_space<vmem>>, vector<8x1xf32>
      %c0_25 = arith.constant 0 : index
      %c0_26 = arith.constant 0 : index
      %c0_27 = arith.constant 0 : index
      %31 = vector.load %arg5[%c0_25, %c0_26, %c0_27] : memref<1x8x1xf32, #tpu.memory_space<vmem>>, vector<1x8x1xf32>
      %32 = vector.shape_cast %31 : vector<1x8x1xf32> to vector<8x1xf32>
      %33 = vector.shape_cast %30 : vector<8x1xf32> to vector<1x8x1xf32>
      tpu.vector_store %arg5[%c0_25, %c0_26, %c0_27], %33 {strides = array<i32>} : memref<1x8x1xf32, #tpu.memory_space<vmem>>, vector<1x8x1xf32>,
    } else {
    }
    return
  }
  func.func @transform_0(%arg0: i32, %arg1: i32) -> (i32, i32) {
    %c0_i32 = arith.constant 0 : i32
    %c0_i32_0 = arith.constant 0 : i32
    %c0_i32_1 = arith.constant 0 : i32
    return %c0_i32, %c0_i32_0 : i32, i32
  }
  func.func @transform_1(%arg0: i32, %arg1: i32) -> (i32, i32) {
    %c1_i32 = arith.constant 1 : i32
    %0 = arith.muli %arg0, %c1_i32 : i32
    %1 = arith.addi %0, %arg1 : i32
    %c0_i32 = arith.constant 0 : i32
    %c0_i32_0 = arith.constant 0 : i32
    return %1, %c0_i32 : i32, i32
  }
  func.func @transform_2(%arg0: i32, %arg1: i32) -> (i32, i32, i32) {
    %c0_i32 = arith.constant 0 : i32
    %c0_i32_0 = arith.constant 0 : i32
    %c0_i32_1 = arith.constant 0 : i32
    return %arg0, %c0_i32, %c0_i32_0 : i32, i32, i32
  }
  func.func @transform_3(%arg0: i32, %arg1: i32) -> (i32, i32, i32) {
    %c0_i32 = arith.constant 0 : i32
    %c0_i32_0 = arith.constant 0 : i32
    %c0_i32_1 = arith.constant 0 : i32
    return %arg0, %c0_i32, %c0_i32_0 : i32, i32, i32
  }
}

</mosaic_0001>

<bundles_post_ra>
// kernel: tpu_custom_call.1
= control target key start
LH: loop header
LB: loop body
LE: loop exit
PB: predicated region body
PF: predicated region fallthrough
CT: control target
= control target key end

     0   :  { %vm41_vm0 = vcmask 261120   ;;  %vm43_vm2 = vcmask 7168   ;;  %v424_v52 = vmov -inf   ;;  %v425_v56 = vmov 0   ;;  %s599_s1 = inlined_call_operand.vmem [shape: f32[256,32], index: 1, kind: input, shape index: {}]   ;;  %s600_s0 = inlined_call_operand.vmem [shape: f32[8,32], index: 0, kind: input, shape index: {}]   ;;  %s601_s2 = inlined_call_operand.vmem [shape: f32[1,8,1], index: 2, kind: output, shape index: {0}]   ;;  %s602_s3 = inlined_call_operand.vmem [shape: f32[1,8,1], index: 3, kind: output, shape index: {1}]  }
   0x1   :  { %v63_v0 = vld [vmem:[%s599_s1 + $0x80] sm:$0xff]  ;;  %v64_v1 = vld [vmem:[%s599_s1 + $0x88] sm:$0xff]  ;;  %vm455_vm1 = vmpackc.low %vm41_vm0, %vm41_vm0  ;;  %44 = vst.msk [vmem:[#allocation3] sm:$0xff] %vm43_vm2, %v424_v52  ;;  %417 = vset.pattern.permute.xlu0 %v425_v56  ;;  %v426_v57 = vmov 0.0  }
   0x2   :  { %v366_v3 = vpack.c.bf16 %v64_v1, %v63_v0  ;;  %v47_v4 = vld [vmem:[%s599_s1] sm:$0xff]  ;;  %v48_v5 = vld [vmem:[%s599_s1 + $0x8] sm:$0xff]  ;;  %v65_v6 = vld [vmem:[%s599_s1 + $0x90] sm:$0xff]  ;;  %45 = vst.msk [vmem:[#allocation4] sm:$0xff] %vm43_vm2, %v426_v57 }
   0x3   :  { %v369_v7 = vpack.c.bf16 %v48_v5, %v47_v4  ;;  %v66_v8 = vld [vmem:[%s599_s1 + $0x98] sm:$0xff]  ;;  %v49_v10 = vld [vmem:[%s599_s1 + $0x10] sm:$0xff]  ;;  %v67_v12 = vld [vmem:[%s599_s1 + $0xa0] sm:$0xff] }
   0x4   :  { %368 = vmatprep.subr.msk.bf16.mxu0 %vm455_vm1, %v366_v3  ;;  %v372_v9 = vpack.c.bf16 %v66_v8, %v65_v6  ;;  %v50_v11 = vld [vmem:[%s599_s1 + $0x18] sm:$0xff]  ;;  %v68_v13 = vld [vmem:[%s599_s1 + $0xa8] sm:$0xff]  ;;  %v39_v16 = vld [vmem:[%s600_s0] sm:$0xff] }
   0x5   :  { %371 = vmatpush3.bf16.xpose.msk.msra.mxu0 %vm455_vm1, %v369_v7  ;;  %v375_v14 = vpack.c.bf16 %v50_v11, %v49_v10  ;;  %v378_v15 = vpack.c.bf16 %v68_v13, %v67_v12  ;;  %v40_v17 = vmul.f32 20.0, %v39_v16  ;;  %v51_v18 = vld [vmem:[%s599_s1 + $0x20] sm:$0xff]  ;;  %v52_v19 = vld [vmem:[%s599_s1 + $0x28] sm:$0xff]  ;;  %v69_v20 = vld [vmem:[%s599_s1 + $0xb0] sm:$0xff] }
   0x6   :  { %374 = vmatprep.subr.msk.bf16.mxu0 %vm455_vm1, %v372_v9  ;;  %v70_v21 = vld [vmem:[%s599_s1 + $0xb8] sm:$0xff]  ;;  %v381_v22 = vpack.c.bf16 %v52_v19, %v51_v18  ;;  %v53_v24 = vld [vmem:[%s599_s1 + $0x30] sm:$0xff]  ;;  %v71_v27 = vld [vmem:[%s599_s1 + $0xc0] sm:$0xff] }
   0x7   :  { %42 = vst.msk [vmem:[#allocation2] sm:$0xff] %vm41_vm0, %v40_v17  ;;  %v384_v23 = vpack.c.bf16 %v70_v21, %v69_v20  ;;  %v54_v25 = vld [vmem:[%s599_s1 + $0x38] sm:$0xff]  ;;  %v72_v28 = vld [vmem:[%s599_s1 + $0xc8] sm:$0xff]  ;;  %v55_v31 = vld [vmem:[%s599_s1 + $0x40] sm:$0xff] }
   0x8   :  { %v387_v29 = vpack.c.bf16 %v54_v25, %v53_v24  ;;  %v390_v30 = vpack.c.bf16 %v72_v28, %v71_v27  ;;  %v56_v32 = vld [vmem:[%s599_s1 + $0x48] sm:$0xff]  ;;  %v73_v33 = vld [vmem:[%s599_s1 + $0xd0] sm:$0xff]  ;;  %v74_v34 = vld [vmem:[%s599_s1 + $0xd8] sm:$0xff] }
   0x9   :  { %v393_v35 = vpack.c.bf16 %v56_v32, %v55_v31  ;;  %v396_v36 = vpack.c.bf16 %v74_v34, %v73_v33  ;;  %v57_v37 = vld [vmem:[%s599_s1 + $0x50] sm:$0xff]  ;;  %v58_v38 = vld [vmem:[%s599_s1 + $0x58] sm:$0xff]  ;;  %v75_v39 = vld [vmem:[%s599_s1 + $0xe0] sm:$0xff] }
   0xa   :  { %v76_v40 = vld [vmem:[%s599_s1 + $0xe8] sm:$0xff]  ;;  %v399_v41 = vpack.c.bf16 %v58_v38, %v57_v37  ;;  %v59_v43 = vld [vmem:[%s599_s1 + $0x60] sm:$0xff]  ;;  %v77_v45 = vld [vmem:[%s599_s1 + $0xf0] sm:$0xff] }
   0xb   :  { %v402_v42 = vpack.c.bf16 %v76_v40, %v75_v39  ;;  %v60_v44 = vld [vmem:[%s599_s1 + $0x68] sm:$0xff]  ;;  %v78_v46 = vld [vmem:[%s599_s1 + $0xf8] sm:$0xff]  ;;  %v61_v49 = vld [vmem:[%s599_s1 + $0x70] sm:$0xff] }
   0xc   :  { %v405_v47 = vpack.c.bf16 %v60_v44, %v59_v43  ;;  %v408_v48 = vpack.c.bf16 %v78_v46, %v77_v45  ;;  %v62_v50 = vld [vmem:[%s599_s1 + $0x78] sm:$0xff]  ;;  %v250_v58 = vld [vmem:[#allocation3] sm:$0xff]  ;;  %v255_v9 = vld [vmem:[#allocation4] sm:$0xff] }
   0xd   :  { %377 = vmatpush3.bf16.xpose.msk.msra.mxu0 %vm455_vm1, %v375_v14  ;;  %v411_v51 = vpack.c.bf16 %v62_v50, %v61_v49 }
   0xe   :  { %380 = vmatprep.subr.msk.bf16.mxu0 %vm455_vm1, %v378_v15  ;;  %v46_v26 = vld [vmem:[#allocation2] sm:$0xff] }
   0xf   :  { %364 = vmatprep.mubr.msk.f32.mxu0 %vm41_vm0, %v46_v26 }
  0x15   :  { %383 = vmatpush3.bf16.xpose.msk.msra.mxu0 %vm455_vm1, %v381_v22 }
  0x16   :  { %386 = vmatprep.subr.msk.bf16.mxu0 %vm455_vm1, %v384_v23 }
  0x1d   :  { %389 = vmatpush3.bf16.xpose.msk.msra.mxu0 %vm455_vm1, %v387_v29 }
  0x1e   :  { %392 = vmatprep.subr.msk.bf16.mxu0 %vm455_vm1, %v390_v30 }
  0x25   :  { %395 = vmatpush3.bf16.xpose.msk.msra.mxu0 %vm455_vm1, %v393_v35 }
  0x26   :  { %398 = vmatprep.subr.msk.bf16.mxu0 %vm455_vm1, %v396_v36 }
  0x2d   :  { %401 = vmatpush3.bf16.xpose.msk.msra.mxu0 %vm455_vm1, %v399_v41 }
  0x2e   :  { %404 = vmatprep.subr.msk.bf16.mxu0 %vm455_vm1, %v402_v42 }
  0x35   :  { %407 = vmatpush3.bf16.xpose.msk.msra.mxu0 %vm455_vm1, %v405_v47 }
  0x36   :  { %410 = vmatprep.subr.msk.bf16.mxu0 %vm455_vm1, %v408_v48 }
  0x3d   :  { %413 = vmatpush3.bf16.xpose.msk.msra.mxu0 %vm455_vm1, %v411_v51 }
  0x44   :  { %365 = vmatmul.mubr.msk.f32.vlgmr.msra.gmra.mrb[0].mxu0 %vm41_vm0, %v46_v26 }
 0x117   :  { %v245_v53 = vpop.f32.mrb[0].mxu0 }
 0x118   :  { %v247_v54 = vpop.f32.mrb[1].mxu0 }
 0x119   :  { %v251_v55 = vmax.f32 %v245_v53, %v247_v54 }
 0x11b   :  { %252 = vmax.xlane.f32.xlu0 %v251_v55 }
 0x1a8   :  { %v253_v59 = vpop.xlane.xlu0 %252 }
 0x1a9   :  { %v254_v60 = vmax.f32 %v250_v58, %v253_v59 }
 0x1ab   :  { %v256_v61 = vsub.f32 %v250_v58, %v254_v60  ;;  %277 = vst.msk [vmem:[#allocation3] sm:$0xff] %vm43_vm2, %v254_v60  ;;  %262 = vperm.xlu0 %417, %v254_v60  }
 0x1ad   :  { %v257_v7 = vmul.f32 1.442695, %v256_v61 }
 0x1b2   :  { %v281_v62 = vld [vmem:[#allocation3] sm:$0xff] }
 0x1b3   :  { %282 = vst.msk [vmem:[%s601_s2] sm:$0xff] %vm43_vm2, %v281_v62 }
 0x22a   :  { %v263_v63 = vpop.permute.xlu0 %262 }
 0x22b   :  { %v265_v0 = vsub.f32 %v245_v53, %v263_v63  ;;  %v266_v1 = vsub.f32 %v247_v54, %v263_v63 }
 0x22d   :  { %v267_v2 = vmul.f32 1.442695, %v265_v0  ;;  %v269_v3 = vmul.f32 1.442695, %v266_v1 }
 0x22f   :  { %418 = vpow2.f32 %v267_v2 }
 0x230   :  { %420 = vpow2.f32 %v269_v3 }
 0x231   :  { %422 = vpow2.f32 %v257_v7 }
 0x239   :  { %v419_v4 = vpop.eup %418 }
 0x23a   :  { %v421_v5 = vpop.eup %420 }
 0x23b   :  { %v271_v6 = vadd.f32 %v421_v5, %v419_v4  ;;  %v423_v8 = vpop.eup %422 }
 0x23c   :  { %v259_v10 = vmul.f32 %v423_v8, %v255_v9 }
 0x23d   :  { %272 = vadd.xlane.f32.xlu1 %v271_v6 }
 0x2ca   :  { %v273_v11 = vpop.xlane.xlu1 %272 }
 0x2cb   :  { %v274_v12 = vadd.f32 %v273_v11, %v259_v10 }
 0x2cd   :  { %276 = vst.msk [vmem:[#allocation4] sm:$0xff] %vm43_vm2, %v274_v12 }
 0x2d4   :  { %v283_v13 = vld [vmem:[#allocation4] sm:$0xff] }
 0x2d5   :  { %284 = vst.msk [vmem:[%s602_s3] sm:$0xff] %vm43_vm2, %v283_v13 }

</bundles_post_ra>
